<compile_context>
chip_gen: v5e
topology: v5e:2x2
jax: 0.10.0
libtpu: 0.0.40
codegen_flags: <defaults>
</compile_context>

<pallas_src>
import functools

import jax
import jax.numpy as jnp
from jax.experimental import pallas as pl
from jax.experimental.pallas import tpu as pltpu


def _fold_lanes(a):
    """(tb, td) -> (tb, 128) by summing 128-lane groups. Pure vreg adds."""
    tb, td = a.shape
    if td <= 128 or td % 128 != 0:
        return a
    acc = a[:, 0:128]
    for g in range(1, td // 128):
        acc = acc + a[:, g * 128:(g + 1) * 128]
    return acc


def _fold_sublanes(a):
    """(tb, td) -> (8, td) by summing 8-row groups. Pure vreg adds."""
    tb, td = a.shape
    if tb <= 8 or tb % 8 != 0:
        return a
    acc = a[0:8, :]
    for g in range(1, tb // 8):
        acc = acc + a[g * 8:(g + 1) * 8, :]
    return acc


def bce_kernel(x_ref, y_ref, out_ref, *, n_rows, n_cols, tile_b, tile_d):
    i = pl.program_id(0)          # row-tile index ("parallel" axis)
    j = pl.program_id(1)          # col-tile index (reduction axis, innermost)

    # Per-row-tile partial-sum block stays resident across the whole j loop
    # (same output block index for every j); zero it on the first j step.
    @pl.when(j == 0)
    def _init():
        out_ref[...] = jnp.zeros_like(out_ref)

    # Load in native dtype, cast after load (halves HBM read traffic for bf16).
    x = x_ref[...].astype(jnp.float32)
    y = y_ref[...].astype(jnp.float32)

    # Elementwise BCE; match PyTorch's clamp of the log terms at -100.
    log_x = jnp.maximum(jnp.log(x), -100.0)
    log_1mx = jnp.maximum(jnp.log1p(-x), -100.0)
    elem = -(y * log_x + (1.0 - y) * log_1mx)

    # Mask tail elements only along axes whose extent is not a tile multiple
    # (static Python check -> zero cost for aligned shapes).  Out-of-bounds
    # lanes of a partial edge block hold unspecified data; jnp.where selects
    # 0.0 there, so NaN/garbage never propagates into the sum.
    if n_rows % tile_b != 0:
        row = i * tile_b + jax.lax.broadcasted_iota(jnp.int32, elem.shape, 0)
        elem = jnp.where(row < n_rows, elem, 0.0)
    if n_cols % tile_d != 0:
        col = j * tile_d + jax.lax.broadcasted_iota(jnp.int32, elem.shape, 1)
        elem = jnp.where(col < n_cols, elem, 0.0)

    # Fold the tile down to a small lane-dense partial with pure VALU adds
    # (no per-step cross-lane XLU reduce, no tiny masked stores).
    part = _fold_sublanes(_fold_lanes(elem))
    out_ref[...] += part[None, :, :]


def bce_loss(x, y):
    """Mean binary cross entropy of probabilities x against targets y.

    Matches torch.nn.functional.binary_cross_entropy (reduction='mean').
    """
    assert x.shape == y.shape, (x.shape, y.shape)
    count = int(x.size)

    # Flatten leading dims; keep the last dim on the lane axis (free reshape).
    if x.ndim == 0:
        x2, y2 = x.reshape(1, 1), y.reshape(1, 1)
    elif x.ndim == 1:
        x2, y2 = x.reshape(1, -1), y.reshape(1, -1)
    else:
        x2 = x.reshape(-1, x.shape[-1])
        y2 = y.reshape(-1, y.shape[-1])
    B, D = x2.shape

    # Tile selection: large lane-dense blocks (~2 MiB of f32) so this pure
    # streaming (HBM-bound) kernel runs near the HBM roofline, while the
    # double-buffered input footprint stays well under v5e's 16 MiB scoped
    # VMEM default and v7x's 64 MiB physical VMEM.
    MAX_TILE_D = 2048                     # lane-dim cap (multiple of 128)
    TARGET_TILE_ELEMS = 512 * 1024        # ~2 MiB per f32 tile
    MAX_TILE_B = 1024

    if D <= MAX_TILE_D:
        TILE_D = D                        # full lane dim: no column masking
    else:
        TILE_D = MAX_TILE_D
    max_rows = max(8, (TARGET_TILE_ELEMS // TILE_D) // 8 * 8)
    TILE_B = B if B <= max_rows else min(max_rows, MAX_TILE_B)

    grid = (pl.cdiv(B, TILE_B), pl.cdiv(D, TILE_D))

    # Shape of the per-row-tile partial produced by the in-kernel folds.
    ACC_D = 128 if (TILE_D > 128 and TILE_D % 128 == 0) else TILE_D
    ACC_B = 8 if (TILE_B > 8 and TILE_B % 8 == 0) else TILE_B

    kernel = functools.partial(
        bce_kernel, n_rows=B, n_cols=D, tile_b=TILE_B, tile_d=TILE_D)

    partials = pl.pallas_call(
        kernel,
        out_shape=jax.ShapeDtypeStruct((grid[0], ACC_B, ACC_D), jnp.float32),
        grid=grid,
        in_specs=[
            pl.BlockSpec((TILE_B, TILE_D), lambda i, j: (i, j)),
            pl.BlockSpec((TILE_B, TILE_D), lambda i, j: (i, j)),
        ],
        # One partial-sum block per row tile, resident across the j axis.
        out_specs=pl.BlockSpec((1, ACC_B, ACC_D), lambda i, j: (i, 0, 0)),
        compiler_params=pltpu.CompilerParams(
            # Row tiles are independent -> "parallel" lets v7x's two
            # TensorCores split axis 0; the column axis carries the resident
            # accumulator -> "arbitrary" (and is the innermost grid axis).
            dimension_semantics=("parallel", "arbitrary"),
            vmem_limit_bytes=32 * 1024 * 1024,
        ),
    )(x2, y2)

    # Tiny final reduction + mean normalization in plain JAX.
    return jnp.sum(partials) * (1.0 / count)


def bce_loss_ref(x, y):
    """Pure-JAX reference matching F.binary_cross_entropy (mean)."""
    x = x.astype(jnp.float32)
    y = y.astype(jnp.float32)
    log_x = jnp.maximum(jnp.log(x), -100.0)
    log_1mx = jnp.maximum(jnp.log1p(-x), -100.0)
    return jnp.mean(-(y * log_x + (1.0 - y) * log_1mx))


if __name__ == "__main__":
    key = jax.random.PRNGKey(0)
    kx, ky = jax.random.split(key)

    # 16 samples, 300 per-concept probabilities (D deliberately not a multiple
    # of 128; handled by the full-lane-dim block path, no masking needed).
    B, D = 16, 300
    x = jax.random.uniform(kx, (B, D), jnp.float32, minval=0.01, maxval=0.99)
    y = (jax.random.uniform(ky, (B, D)) < 0.3).astype(jnp.float32)

    out = jax.block_until_ready(bce_loss(x, y))
    ref = bce_loss_ref(x, y)
    assert out.shape == (), out.shape
    assert jnp.allclose(out, ref, atol=1e-5, rtol=1e-5), (out, ref)

    # Second check: exercises the tiled path (multiple row/col tiles, edge
    # masking on both axes, accumulation across the column grid axis, native
    # bf16 input cast inside the kernel).
    k2x, k2y = jax.random.split(ky)
    B2, D2 = 1037, 3000
    x_big = jax.random.uniform(
        k2x, (B2, D2), jnp.float32, minval=0.01, maxval=0.99
    ).astype(jnp.bfloat16)
    y_big = (jax.random.uniform(k2y, (B2, D2)) < 0.3).astype(jnp.float32)

    out_big = jax.block_until_ready(bce_loss(x_big, y_big))
    ref_big = bce_loss_ref(x_big, y_big)
    assert jnp.allclose(out_big, ref_big, atol=1e-5, rtol=1e-4), (out_big, ref_big)

    print("KERNEL_OK")
</pallas_src>

<mosaic_0001>
module attributes {stable_mosaic.version = 11 : i64} {
  func.func @bce_kernel(%arg0: i32, %arg1: i32, %arg2: memref<16x300xf32, #tpu.memory_space<vmem>>, %arg3: memref<16x300xf32, #tpu.memory_space<vmem>>, %arg4: memref<1x8x300xf32, #tpu.memory_space<vmem>>) attributes {dimension_semantics = [#tpu.dimension_semantics<parallel>, #tpu.dimension_semantics<arbitrary>], iteration_bounds = array<i64: 1, 1>, scalar_prefetch = 0 : i64, scratch_operands = 0 : i64, tpu.core_type = #tpu.core_type<tc>, window_params = [{transform_indices = @transform_0, window_bounds = array<i64: 16, 300>}, {transform_indices = @transform_1, window_bounds = array<i64: 16, 300>}, {transform_indices = @transform_2, window_bounds = array<i64: 1, 8, 300>}]} {
    %c0_i32 = arith.constant 0 : i32
    %0 = arith.cmpi eq, %arg1, %c0_i32 : i32
    %1 = arith.extui %0 : i1 to i32
    %c0_i32_0 = arith.constant 0 : i32
    %2 = arith.cmpi ne, %1, %c0_i32_0 : i32
    scf.if %2 {
      %cst_14 = arith.constant 0.000000e+00 : f32
      %27 = vector.broadcast %cst_14 : f32 to vector<1x8x300xf32>
      %c0_15 = arith.constant 0 : index
      %c0_16 = arith.constant 0 : index
      %c0_17 = arith.constant 0 : index
      %28 = vector.load %arg4[%c0_15, %c0_16, %c0_17] : memref<1x8x300xf32, #tpu.memory_space<vmem>>, vector<1x8x300xf32>
      tpu.vector_store %arg4[%c0_15, %c0_16, %c0_17], %27 {strides = array<i32>} : memref<1x8x300xf32, #tpu.memory_space<vmem>>, vector<1x8x300xf32>,
    } else {
    }
    %c0 = arith.constant 0 : index
    %c0_1 = arith.constant 0 : index
    %3 = vector.load %arg2[%c0, %c0_1] : memref<16x300xf32, #tpu.memory_space<vmem>>, vector<16x300xf32>
    %c0_2 = arith.constant 0 : index
    %c0_3 = arith.constant 0 : index
    %4 = vector.load %arg3[%c0_2, %c0_3] : memref<16x300xf32, #tpu.memory_space<vmem>>, vector<16x300xf32>
    %5 = math.log %3 : vector<16x300xf32>
    %cst = arith.constant -1.000000e+02 : f32
    %6 = vector.broadcast %cst : f32 to vector<16x300xf32>
    %7 = arith.maximumf %5, %6 : vector<16x300xf32>
    %cst_4 = arith.constant 0.000000e+00 : f32
    %8 = vector.broadcast %cst_4 : f32 to vector<16x300xf32>
    %9 = arith.subf %8, %3 : vector<16x300xf32>
    %10 = math.log1p %9 : vector<16x300xf32>
    %cst_5 = arith.constant -1.000000e+02 : f32
    %11 = vector.broadcast %cst_5 : f32 to vector<16x300xf32>
    %12 = arith.maximumf %10, %11 : vector<16x300xf32>
    %13 = arith.mulf %4, %7 : vector<16x300xf32>
    %cst_6 = arith.constant 1.000000e+00 : f32
    %14 = vector.broadcast %cst_6 : f32 to vector<16x300xf32>
    %15 = arith.subf %14, %4 : vector<16x300xf32>
    %16 = arith.mulf %15, %12 : vector<16x300xf32>
    %17 = arith.addf %13, %16 : vector<16x300xf32>
    %cst_7 = arith.constant 0.000000e+00 : f32
    %18 = vector.broadcast %cst_7 : f32 to vector<16x300xf32>
    %19 = arith.subf %18, %17 : vector<16x300xf32>
    %20 = vector.extract_strided_slice %19 {offsets = [0, 0], sizes = [8, 300], strides = [1, 1]} : vector<16x300xf32> to vector<8x300xf32>
    %21 = vector.extract_strided_slice %19 {offsets = [8, 0], sizes = [8, 300], strides = [1, 1]} : vector<16x300xf32> to vector<8x300xf32>
    %22 = arith.addf %20, %21 : vector<8x300xf32>
    %c0_8 = arith.constant 0 : index
    %c0_9 = arith.constant 0 : index
    %c0_10 = arith.constant 0 : index
    %23 = vector.load %arg4[%c0_8, %c0_9, %c0_10] : memref<1x8x300xf32, #tpu.memory_space<vmem>>, vector<1x8x300xf32>
    %24 = vector.shape_cast %22 : vector<8x300xf32> to vector<1x8x300xf32>
    %25 = arith.addf %23, %24 : vector<1x8x300xf32>
    %c0_11 = arith.constant 0 : index
    %c0_12 = arith.constant 0 : index
    %c0_13 = arith.constant 0 : index
    %26 = vector.load %arg4[%c0_11, %c0_12, %c0_13] : memref<1x8x300xf32, #tpu.memory_space<vmem>>, vector<1x8x300xf32>
    tpu.vector_store %arg4[%c0_11, %c0_12, %c0_13], %25 {strides = array<i32>} : memref<1x8x300xf32, #tpu.memory_space<vmem>>, vector<1x8x300xf32>,
    return
  }
  func.func @transform_0(%arg0: i32, %arg1: i32) -> (i32, i32) {
    %c0_i32 = arith.constant 0 : i32
    return %arg0, %arg1 : i32, i32
  }
  func.func @transform_1(%arg0: i32, %arg1: i32) -> (i32, i32) {
    %c0_i32 = arith.constant 0 : i32
    return %arg0, %arg1 : i32, i32
  }
  func.func @transform_2(%arg0: i32, %arg1: i32) -> (i32, i32, i32) {
    %c0_i32 = arith.constant 0 : i32
    %c0_i32_0 = arith.constant 0 : i32
    %c0_i32_1 = arith.constant 0 : i32
    return %arg0, %c0_i32, %c0_i32_0 : i32, i32, i32
  }
}

</mosaic_0001>

<bundles_post_ra>
// kernel: tpu_custom_call.1
= control target key start
LH: loop header
LB: loop body
LE: loop exit
PB: predicated region body
PF: predicated region fallthrough
CT: control target
= control target key end

     0   :  { %7 = vsyncpa [#allocation3], 0  ;;  %s381_s0 = inlined_call_operand.hbm [shape: f32[16,300], index: 0, kind: input, shape index: {}]   ;;  %s382_s1 = inlined_call_operand.hbm [shape: f32[16,300], index: 1, kind: input, shape index: {}]   ;;  %s383_s2 = inlined_call_operand.hbm [shape: f32[1,8,300], index: 2, kind: output, shape index: {}]  }
   0x1   :  { %8 = vsyncpa [#allocation6], 0 }
   0x2   :  { %9 = vsyncpa [#allocation4], 0  ;;  %s14_s11 = sshll.u32 %s381_s0, 4  ;;  %s317_s12 = smov [#allocation2]   ;;  %s15_s11 = int_to_ptr.hbm [resolvable:$true] %s14_s11 }
   0x3   :  { %s16_s13 = sshll.u32 %s317_s12, 4  ;;  %s27_s16 = sshll.u32 %s382_s1, 4  ;;  %s17_s13 = int_to_ptr.vmem [resolvable:$true] %s16_s13  ;;  %s28_s16 = int_to_ptr.hbm [resolvable:$true] %s27_s16 }
   0x4   :  { %s318_s17 = smov 384   ;;  %s319_s18 = smov 24  }
   0x5   :  { %22 = dma.hbm_to_vmem [thread:$0]  %s15_s11, 768, %s17_s13, [#allocation3], %s318_s17, %s318_s17, %s319_s18  }
   0x6   :  { %s320_s19 = smov [#allocation5]  }
   0x7   :  { %s29_s20 = sshll.u32 %s320_s19, 4  ;;  %s30_s20 = int_to_ptr.vmem [resolvable:$true] %s29_s20 }
   0x8   :  { %35 = dma.hbm_to_vmem [thread:$0]  %s28_s16, 768, %s30_s20, [#allocation6], %s318_s17, %s318_s17, %s319_s18  }
   0x9   :  { %311 = dma.done.wait [#allocation3], 768  }
   0xa   :  { %312 = vsyncadd [#allocation3], 4294966528 }
   0xb   :  { %313 = dma.done.wait [#allocation6], 768  }
   0xc   :  { %314 = vsyncadd [#allocation6], 4294966528  ;;  %vm50_vm0 = vcmask 359424   ;;  %v321_v0 = vmov 0.0   ;;  %v52_v1 = vld [vmem:[#allocation2] sm:$0xff]  ;;  %v55_v2 = vld [vmem:[#allocation2 + $0x18] sm:$0xff] }
   0xd   :  { %51 = vst.msk [vmem:[#allocation7 + $0x10] sm:$0xff] %vm50_vm0, %v321_v0  ;;  %215 = vlog2.f32 %v52_v1  ;;  %v82_v3 = vsub.f32 0.0, %v52_v1  ;;  %v85_v4 = vsub.f32 0.0, %v55_v2  ;;  %v53_v5 = vld [vmem:[#allocation2 + $0x8] sm:$0xff]  ;;  %v56_v6 = vld [vmem:[#allocation2 + $0x20] sm:$0xff]  ;;  %v345_v9 = vld [vmem:[#allocation5] sm:$0xff] }
   0xe   :  { %217 = vlog2.f32 %v55_v2  ;;  %v83_v7 = vsub.f32 0.0, %v53_v5  ;;  %v86_v8 = vsub.f32 0.0, %v56_v6  ;;  %v347_v14 = vld [vmem:[#allocation5 + $0x18] sm:$0xff]  ;;  %v154_v21 = vsub.f32 1.0, %v345_v9  ;;  %v59_v33 = vld [vmem:[#allocation5 + $0x8] sm:$0xff]  ;;  %v62_v34 = vld [vmem:[#allocation5 + $0x20] sm:$0xff] }
   0xf   :  { %v88_v10 = vadd.f32 1.0, %v82_v3  ;;  %v91_v11 = vmul.f32 -0.5, %v82_v3  ;;  %v94_v12 = vand.u32 2147483647, %v82_v3  ;;  %v115_v13 = vadd.f32 1.0, %v85_v4  ;;  %v54_v46 = vld [vmem:[#allocation2 + $0x10] sm:$0xff] }
  0x10   :  { %v118_v15 = vmul.f32 -0.5, %v85_v4  ;;  %v121_v16 = vand.u32 2147483647, %v85_v4  ;;  %219 = vlog2.f32 %v53_v5  ;;  %v97_v17 = vadd.f32 1.0, %v83_v7  ;;  %v57_v5 = vld [vmem:[#allocation2 + $0x28] sm:$0xff]  ;;  %s322_s0 = smov [#allocation7]  }
  0x11   :  { %221 = vlog2.f32 %v88_v10  ;;  %v92_v18 = vadd.f32 1.0, %v91_v11  ;;  %v100_v19 = vmul.f32 -0.5, %v83_v7  ;;  %v103_v22 = vand.u32 2147483647, %v83_v7  ;;  %s196_s1 = sshll.u32 %s322_s0, 4  ;;  %s198_s23 = sshll.u32 %s383_s2, 4  ;;  %s197_s1 = int_to_ptr.vmem [resolvable:$true] %s196_s1  ;;  %s199_s23 = int_to_ptr.hbm [resolvable:$true] %s198_s23 }
  0x12   :  { %223 = vlog2.f32 %v115_v13  ;;  %v119_v20 = vadd.f32 1.0, %v118_v15  ;;  %v157_v24 = vsub.f32 1.0, %v347_v14  ;;  %v124_v26 = vadd.f32 1.0, %v86_v8 }
  0x13   :  { %v216_v23 = vpop.eup %215  ;;  %225 = vlog2.f32 %v56_v6  ;;  %v101_v25 = vadd.f32 1.0, %v100_v19  ;;  %vm351_vm1 = vcmp.lt.f32.partialorder %v94_v12, 0.0004427343  ;;  %vm355_vm2 = vcmp.lt.f32.partialorder %v121_v16, 0.0004427343 }
  0x14   :  { %v218_v27 = vpop.eup %217  ;;  %v65_v28 = vmul.f32 0.6931472, %v216_v23  ;;  %227 = vlog2.f32 %v97_v17  ;;  %v93_v32 = vmul.f32 %v92_v18, %v82_v3  ;;  %v127_v35 = vmul.f32 -0.5, %v86_v8 }
  0x15   :  { %v71_v31 = vmul.f32 0.6931472, %v218_v27  ;;  %229 = vlog2.f32 %v124_v26  ;;  %v120_v38 = vmul.f32 %v119_v20, %v85_v4  ;;  %vm359_vm3 = vcmp.lt.f32.partialorder %v103_v22, 0.0004427343 }
  0x16   :  { %v220_v36 = vpop.eup %219  ;;  %v76_v37 = vmax.f32 %v65_v28, -100.0  ;;  %v130_v40 = vand.u32 2147483647, %v86_v8  ;;  %v102_v44 = vmul.f32 %v101_v25, %v83_v7  ;;  %v128_v45 = vadd.f32 1.0, %v127_v35 }
  0x17   :  { %v222_v41 = vpop.eup %221  ;;  %v79_v42 = vmax.f32 %v71_v31, -100.0  ;;  %v67_v43 = vmul.f32 0.6931472, %v220_v36  ;;  %v155_v49 = vsub.f32 1.0, %v59_v33  ;;  %v158_v50 = vsub.f32 1.0, %v62_v34  ;;  %v60_v36 = vld [vmem:[#allocation5 + $0x10] sm:$0xff] }
  0x18   :  { %v224_v47 = vpop.eup %223  ;;  %v90_v48 = vmul.f32 0.6931472, %v222_v41  ;;  %231 = vlog2.f32 %v54_v46  ;;  %v148_v53 = vmul.f32 %v76_v37, %v345_v9  ;;  %vm364_vm4 = vcmp.lt.f32.partialorder %v130_v40, 0.0004427343 }
  0x19   :  { %v226_v51 = vpop.eup %225  ;;  %v117_v52 = vmul.f32 0.6931472, %v224_v47  ;;  %v77_v54 = vmax.f32 %v67_v43, -100.0  ;;  %v129_v59 = vmul.f32 %v128_v45, %v86_v8  ;;  %v84_v60 = vsub.f32 0.0, %v54_v46  ;;  %v63_v46 = vld [vmem:[#allocation5 + $0x28] sm:$0xff] }
  0x1a   :  { %v228_v56 = vpop.eup %227  ;;  %v96_v57 = vsel %vm351_vm1, %v93_v32, %v90_v48  ;;  %v73_v58 = vmul.f32 0.6931472, %v226_v51  ;;  %v151_v0 = vmul.f32 %v79_v42, %v347_v14  ;;  %233 = vlog2.f32 %v57_v5 }
  0x1b   :  { %v230_v61 = vpop.eup %229  ;;  %v123_v62 = vsel %vm355_vm2, %v120_v38, %v117_v52  ;;  %v142_v63 = vmax.f32 %v96_v57, -100.0  ;;  %v99_v1 = vmul.f32 0.6931472, %v228_v56  ;;  %v106_v6 = vadd.f32 1.0, %v84_v60 }
  0x1c   :  { %v145_v2 = vmax.f32 %v123_v62, -100.0  ;;  %v80_v3 = vmax.f32 %v73_v58, -100.0  ;;  %v126_v4 = vmul.f32 0.6931472, %v230_v61  ;;  %v109_v8 = vmul.f32 -0.5, %v84_v60 }
  0x1d   :  { %v160_v7 = vmul.f32 %v154_v21, %v142_v63  ;;  %v105_v9 = vsel %vm359_vm3, %v102_v44, %v99_v1  ;;  %v149_v15 = vmul.f32 %v77_v54, %v59_v33  ;;  %v87_v18 = vsub.f32 0.0, %v57_v5  ;;  %v183_v63 = vld [vmem:[#allocation7 + $0x10] sm:$0xff] }
  0x1e   :  { %v232_v10 = vpop.eup %231  ;;  %v163_v11 = vmul.f32 %v157_v24, %v145_v2  ;;  %v132_v12 = vsel %vm364_vm4, %v129_v59, %v126_v4  ;;  %v143_v13 = vmax.f32 %v105_v9, -100.0  ;;  %v152_v17 = vmul.f32 %v80_v3, %v62_v34 }
  0x1f   :  { %v166_v14 = vadd.f32 %v160_v7, %v148_v53  ;;  %v146_v16 = vmax.f32 %v132_v12, -100.0  ;;  %235 = vlog2.f32 %v106_v6  ;;  %v110_v23 = vadd.f32 1.0, %v109_v8 }
  0x20   :  { %v169_v19 = vadd.f32 %v163_v11, %v151_v0  ;;  %v161_v20 = vmul.f32 %v155_v49, %v143_v13  ;;  %v112_v27 = vand.u32 2147483647, %v84_v60  ;;  %v234_v28 = vpop.eup %233  ;;  %v69_v29 = vmul.f32 0.6931472, %v232_v10 }
  0x21   :  { %v172_v21 = vsub.f32 0.0, %v166_v14  ;;  %v164_v22 = vmul.f32 %v158_v50, %v146_v16  ;;  %v133_v30 = vadd.f32 1.0, %v87_v18  ;;  %v136_v31 = vmul.f32 -0.5, %v87_v18 }
  0x22   :  { %v175_v25 = vsub.f32 0.0, %v169_v19  ;;  %v167_v26 = vadd.f32 %v161_v20, %v149_v15  ;;  %v111_v34 = vmul.f32 %v110_v23, %v84_v60  ;;  %v75_v38 = vmul.f32 0.6931472, %v234_v28 }
  0x23   :  { %v170_v24 = vadd.f32 %v164_v22, %v152_v17  ;;  %237 = vlog2.f32 %v133_v30  ;;  %vm113_vm5 = vcmp.lt.f32.partialorder %v112_v27, 0.0004427343  ;;  %v137_v39 = vadd.f32 1.0, %v136_v31 }
  0x24   :  { %v178_v32 = vadd.f32 %v175_v25, %v172_v21  ;;  %v173_v33 = vsub.f32 0.0, %v167_v26  ;;  %v78_v41 = vmax.f32 %v69_v29, -100.0  ;;  %v139_v43 = vand.u32 2147483647, %v87_v18 }
  0x25   :  { %v176_v35 = vsub.f32 0.0, %v170_v24  ;;  %v236_v37 = vpop.eup %235  ;;  %v156_v44 = vsub.f32 1.0, %v60_v36  ;;  %v138_v47 = vmul.f32 %v137_v39, %v87_v18  ;;  %v81_v50 = vmax.f32 %v75_v38, -100.0 }
  0x26   :  { %v108_v42 = vmul.f32 0.6931472, %v236_v37  ;;  %187 = vst [vmem:[#allocation7] sm:$0xff] %v178_v32  ;;  %vm140_vm6 = vcmp.lt.f32.partialorder %v139_v43, 0.0004427343  ;;  %v150_v51 = vmul.f32 %v78_v41, %v60_v36  ;;  %v159_v54 = vsub.f32 1.0, %v63_v46 }
  0x27   :  { %v179_v40 = vadd.f32 %v176_v35, %v173_v33  ;;  %v153_v57 = vmul.f32 %v81_v50, %v63_v46 }
  0x28   :  { %v114_v45 = vsel %vm113_vm5, %v111_v34, %v108_v42 }
  0x29   :  { %v144_v48 = vmax.f32 %v114_v45, -100.0  ;;  %v238_v49 = vpop.eup %237  ;;  %188 = vst [vmem:[#allocation7 + $0x8] sm:$0xff] %v179_v40 }
  0x2a   :  { %v135_v52 = vmul.f32 0.6931472, %v238_v49 }
  0x2b   :  { %v162_v53 = vmul.f32 %v156_v44, %v144_v48 }
  0x2c   :  { %v141_v55 = vsel %vm140_vm6, %v138_v47, %v135_v52 }
  0x2d   :  { %v147_v56 = vmax.f32 %v141_v55, -100.0  ;;  %v168_v58 = vadd.f32 %v162_v53, %v150_v51 }
  0x2f   :  { %v165_v59 = vmul.f32 %v159_v54, %v147_v56  ;;  %v174_v61 = vsub.f32 0.0, %v168_v58 }
  0x31   :  { %v171_v60 = vadd.f32 %v165_v59, %v153_v57 }
  0x33   :  { %v177_v62 = vsub.f32 0.0, %v171_v60 }
  0x35   :  { %v180_v0 = vadd.f32 %v177_v62, %v174_v61 }
  0x37   :  { %v186_v1 = vadd.f32 %v183_v63, %v180_v0 }
  0x39   :  { %190 = vst.msk [vmem:[#allocation7 + $0x10] sm:$0xff] %vm50_vm0, %v186_v1 }
  0x3a   :  { %201 = dma.vmem_to_hbm [thread:$0]  %s197_s1, 384, %s199_s23, [#allocation4]  }
  0x3b   :  { %315 = dma.done.wait [#allocation4], 384  }
  0x3c   :  { %316 = vsyncadd [#allocation4], 4294966912 }
  0x3d   :  { %206 = vsyncpa [#allocation3], 1 }
  0x3e   :  { %207 = vsyncpa [#allocation6], 1 }
  0x3f   :  { %208 = vsyncpa [#allocation4], 1 }

</bundles_post_ra>
